<compile_context>
chip_gen: v7x
topology: tpu7x:2x2x1
jax: 0.10.0
libtpu: 0.0.40
codegen_flags: <defaults>
</compile_context>

<pallas_src>
import functools

import jax
import jax.numpy as jnp
from jax import lax
from jax.experimental import pallas as pl
from jax.experimental.pallas import tpu as pltpu

LRELU_SLOPE = 0.1


def _round_up(n, m):
    return ((n + m - 1) // m) * m


def _resblock2_kernel(tloc_ref, x_ref, w0_ref, b0_ref, w1_ref, b1_ref, o_ref,
                      *, dilations, kernel_size, t_valid, t_pad):
    """One grid step: a [Cp, Bblk*Tp] slab (batch*time flattened onto lanes).

    tloc_ref : [1, L]      per-lane local time index (0..Tp-1, periodic)
    x_ref    : [Cp, L]     input slab; every pad position is exactly zero
    w*_ref   : [Cp, K*Cp]  weight-normed conv weights, taps concatenated along
                           the contraction axis (tap k occupies cols k*Cp:(k+1)*Cp)
    b*_ref   : [Cp, 1]     conv biases (f32)
    o_ref    : [Cp, L]     output slab
    """
    Cp, L = x_ref.shape
    K = kernel_size
    half = K // 2

    x = x_ref[...].astype(jnp.float32)
    t_local = tloc_ref[...]                       # (1, L); broadcasts over sublanes

    need_rezero = t_valid < t_pad
    if need_rezero:
        in_range = t_local < t_valid              # (1, L) bool

    for w_ref, b_ref, d in ((w0_ref, b0_ref, dilations[0]),
                            (w1_ref, b1_ref, dilations[1])):
        xt = jnp.where(x >= 0, x, LRELU_SLOPE * x)          # leaky_relu(x, 0.1)

        # Build the K dilated taps (output t reads xt[t + (k-half)*d]) and stack
        # them on the sublane axis -> one matmul with a K*Cp-deep contraction.
        taps = []
        for k in range(K):
            s = (k - half) * d
            if s == 0:
                tap = xt
            else:
                tap = pltpu.roll(xt, shift=(-s) % L, axis=1)
                if t_pad - t_valid < abs(s):
                    # Roll wraps real data across segment boundaries onto valid
                    # output positions -> re-create the "same" zero padding
                    # with a single (1,L)-broadcast compare.
                    if s > 0:
                        tap = jnp.where(t_local < t_pad - s, tap, 0.0)
                    else:
                        tap = jnp.where(t_local >= -s, tap, 0.0)
                # else: the wrapped lanes only land in the (zero) T padding,
                # which is re-zeroed below, so no mask is needed.
            taps.append(tap)
        taps_cat = jnp.concatenate(taps, axis=0).astype(w_ref.dtype)

        y = jnp.dot(w_ref[...], taps_cat, preferred_element_type=jnp.float32)
        x = y + b_ref[...] + x                               # bias + residual
        if need_rezero:
            # Keep the T padding exactly zero so the next conv's (mask-free)
            # boundary handling matches the reference zero padding.
            x = jnp.where(in_range, x, 0.0)

    o_ref[...] = x.astype(o_ref.dtype)


def resblock2_forward(x, conv_params, kernel_size=3, dilation=(1, 3), *,
                      compute_dtype=jnp.bfloat16, batch_block=None):
    """Pallas equivalent of ResBlock2.forward.

    x           : [B, C, T] float32
    conv_params : list of (v, g, b) per conv, where v is [C, C, K] (weight_norm
                  direction), g is [C] (weight_norm scale) and b is [C].
    """
    B, C, T = x.shape
    K = kernel_size
    Cp = _round_up(C, 8)
    Tp = _round_up(max(T, 128), 128)

    # Rows per grid step: as many full batch rows as keep the f32 x-tile around
    # ~2 MiB (amortizes the ~0.35us per-step overhead, keeps DMAs wide).
    if batch_block is None:
        max_lanes = max(Tp, (2 * 1024 * 1024) // (4 * Cp))
        batch_block = max(1, min(B, max_lanes // Tp))
    Bblk = int(batch_block)
    Bpad = _round_up(B, Bblk)
    Lblk = Bblk * Tp
    Ltot = Bpad * Tp
    grid = (Bpad // Bblk,)

    # Fold weight_norm into effective weights and concatenate the K taps along
    # the input-channel axis -> a single [Cp, K*Cp] matmul operand per conv.
    ws, bs = [], []
    for v, g, b in conv_params:
        norm = jnp.sqrt(jnp.sum(v * v, axis=(1, 2), keepdims=True))
        w = v * (g.reshape(-1, 1, 1) / norm)                 # [C_out, C_in, K]
        w = jnp.pad(w, ((0, Cp - C), (0, Cp - C), (0, 0)))
        w_cat = jnp.concatenate([w[:, :, k] for k in range(K)], axis=1)
        ws.append(w_cat.astype(compute_dtype))               # bf16 feeds the MXU
        bs.append(jnp.pad(b, (0, Cp - C)).reshape(Cp, 1).astype(jnp.float32))

    # Layout plumbing (host side): [B,C,T] -> [Cp, Bpad*Tp], time on lanes.
    xp = jnp.pad(x, ((0, Bpad - B), (0, Cp - C), (0, Tp - T)))
    xp = jnp.transpose(xp, (1, 0, 2)).reshape(Cp, Ltot)

    # Per-lane local time index (periodic with Tp); avoids in-kernel int div.
    tloc = jnp.tile(jnp.arange(Tp, dtype=jnp.int32), Bpad).reshape(1, Ltot)

    # Scoped-VMEM estimate: raise the limit only when the default may be short.
    itemsz = jnp.dtype(compute_dtype).itemsize
    tile_bytes = Cp * Lblk * 4
    est_vmem = (2 * 2 * tile_bytes            # double-buffered x / out slabs
                + 2 * 2 * Cp * K * Cp * itemsz  # double-buffered weights
                + 8 * tile_bytes)             # live f32 intermediates
    vmem_limit = (int(min(est_vmem * 5 // 4, 56 * 1024 * 1024))
                  if est_vmem > 16 * 1024 * 1024 else None)

    kernel = functools.partial(
        _resblock2_kernel,
        dilations=tuple(int(d) for d in dilation),
        kernel_size=K, t_valid=T, t_pad=Tp)

    out = pl.pallas_call(
        kernel,
        grid=grid,
        in_specs=[
            pl.BlockSpec((1, Lblk), lambda i: (0, i)),        # local time index
            pl.BlockSpec((Cp, Lblk), lambda i: (0, i)),       # x slab
            pl.BlockSpec((Cp, K * Cp), lambda i: (0, 0)),     # conv0 weight
            pl.BlockSpec((Cp, 1), lambda i: (0, 0)),          # conv0 bias
            pl.BlockSpec((Cp, K * Cp), lambda i: (0, 0)),     # conv1 weight
            pl.BlockSpec((Cp, 1), lambda i: (0, 0)),          # conv1 bias
        ],
        out_specs=pl.BlockSpec((Cp, Lblk), lambda i: (0, i)),
        out_shape=jax.ShapeDtypeStruct((Cp, Ltot), x.dtype),
        compiler_params=pltpu.CompilerParams(
            dimension_semantics=("parallel",),
            vmem_limit_bytes=vmem_limit),
    )(tloc, xp, ws[0], bs[0], ws[1], bs[1])

    out = out.reshape(Cp, Bpad, Tp).transpose(1, 0, 2)
    return out[:B, :C, :T]


def _ref_resblock2(x, conv_params, kernel_size=3, dilation=(1, 3)):
    """Plain-JAX reference mirroring the PyTorch ResBlock2.forward."""
    for (v, g, b), d in zip(conv_params, dilation):
        norm = jnp.sqrt(jnp.sum(v * v, axis=(1, 2), keepdims=True))
        w = v * (g.reshape(-1, 1, 1) / norm)
        xt = jnp.where(x >= 0, x, LRELU_SLOPE * x)
        pad = (kernel_size * d - d) // 2            # get_padding(k, d)
        y = lax.conv_general_dilated(
            xt, w, window_strides=(1,), padding=[(pad, pad)],
            rhs_dilation=(d,), dimension_numbers=("NCH", "OIH", "NCH"))
        x = y + b[None, :, None] + x
    return x


if __name__ == "__main__":
    key = jax.random.PRNGKey(0)
    B, C, K = 2, 32, 3
    dilation = (1, 3)

    kx, kv0, kb0, kv1, kb1 = jax.random.split(key, 5)

    # init_weights-style N(0, 0.01) directions; weight_norm init g = ||v||.
    v0 = 0.01 * jax.random.normal(kv0, (C, C, K), dtype=jnp.float32)
    g0 = jnp.sqrt(jnp.sum(v0 * v0, axis=(1, 2)))
    b0 = 0.01 * jax.random.normal(kb0, (C,), dtype=jnp.float32)
    v1 = 0.01 * jax.random.normal(kv1, (C, C, K), dtype=jnp.float32)
    g1 = jnp.sqrt(jnp.sum(v1 * v1, axis=(1, 2)))
    b1 = 0.01 * jax.random.normal(kb1, (C,), dtype=jnp.float32)
    conv_params = [(v0, g0, b0), (v1, g1, b1)]

    # (T, matmul dtype, tolerance): T=200 exercises the T-padding / re-zero
    # path, T=128 (== Tp) exercises the explicit boundary-mask path; the f32
    # path is a tight numerical check, bf16 is the MXU-native fast path.
    cases = [(200, jnp.bfloat16, 2e-2),
             (200, jnp.float32, 1e-4),
             (128, jnp.bfloat16, 2e-2)]
    for T, cdt, tol in cases:
        x = jax.random.normal(kx, (B, C, T), dtype=jnp.float32)
        out = resblock2_forward(x, conv_params, kernel_size=K,
                                dilation=dilation, compute_dtype=cdt)
        out = jax.block_until_ready(out)
        ref = _ref_resblock2(x, conv_params, kernel_size=K, dilation=dilation)
        assert out.shape == (B, C, T) and out.dtype == x.dtype
        assert jnp.allclose(out, ref, atol=tol, rtol=tol), \
            f"ResBlock2 mismatch (T={T}, dtype={cdt})"

    print("KERNEL_OK")
</pallas_src>

<mosaic_0001>
module attributes {stable_mosaic.version = 11 : i64} {
  func.func @_resblock2_kernel(%arg0: i32, %arg1: memref<1x512xi32, #tpu.memory_space<vmem>>, %arg2: memref<32x512xf32, #tpu.memory_space<vmem>>, %arg3: memref<32x96xbf16, #tpu.memory_space<vmem>>, %arg4: memref<32x1xf32, #tpu.memory_space<vmem>>, %arg5: memref<32x96xbf16, #tpu.memory_space<vmem>>, %arg6: memref<32x1xf32, #tpu.memory_space<vmem>>, %arg7: memref<32x512xf32, #tpu.memory_space<vmem>>) attributes {dimension_semantics = [#tpu.dimension_semantics<parallel>], iteration_bounds = array<i64: 1>, scalar_prefetch = 0 : i64, scratch_operands = 0 : i64, tpu.core_type = #tpu.core_type<tc>, window_params = [{transform_indices = @transform_0, window_bounds = array<i64: 1, 512>}, {transform_indices = @transform_1, window_bounds = array<i64: 32, 512>}, {pipeline_mode = #tpu.pipeline_mode<synchronous>, transform_indices = @transform_2, window_bounds = array<i64: 32, 96>}, {pipeline_mode = #tpu.pipeline_mode<synchronous>, transform_indices = @transform_3, window_bounds = array<i64: 32, 1>}, {pipeline_mode = #tpu.pipeline_mode<synchronous>, transform_indices = @transform_4, window_bounds = array<i64: 32, 96>}, {pipeline_mode = #tpu.pipeline_mode<synchronous>, transform_indices = @transform_5, window_bounds = array<i64: 32, 1>}, {transform_indices = @transform_6, window_bounds = array<i64: 32, 512>}]} {
    %c0 = arith.constant 0 : index
    %c0_0 = arith.constant 0 : index
    %0 = vector.load %arg2[%c0, %c0_0] : memref<32x512xf32, #tpu.memory_space<vmem>>, vector<32x512xf32>
    %c0_1 = arith.constant 0 : index
    %c0_2 = arith.constant 0 : index
    %1 = vector.load %arg1[%c0_1, %c0_2] : memref<1x512xi32, #tpu.memory_space<vmem>>, vector<1x512xi32>
    %c200_i32 = arith.constant 200 : i32
    %2 = vector.broadcast %c200_i32 : i32 to vector<1x512xi32>
    %3 = arith.cmpi slt, %1, %2 : vector<1x512xi32>
    %cst = arith.constant 0.000000e+00 : f32
    %4 = vector.broadcast %cst : f32 to vector<32x512xf32>
    %5 = arith.cmpf oge, %0, %4 : vector<32x512xf32>
    %cst_3 = arith.constant 1.000000e-01 : f32
    %6 = vector.broadcast %cst_3 : f32 to vector<32x512xf32>
    %7 = arith.mulf %6, %0 : vector<32x512xf32>
    %8 = arith.select %5, %0, %7 : vector<32x512xi1>, vector<32x512xf32>
    %c1_i32 = arith.constant 1 : i32
    %9 = tpu.dynamic_rotate %8 by %c1_i32 dim 1 : vector<32x512xf32>, i32 -> vector<32x512xf32>
    %c511_i32 = arith.constant 511 : i32
    %10 = tpu.dynamic_rotate %8 by %c511_i32 dim 1 : vector<32x512xf32>, i32 -> vector<32x512xf32>
    %11 = tpu.concatenate %9, %8, %10 in 0 : vector<32x512xf32>, vector<32x512xf32>, vector<32x512xf32> -> vector<96x512xf32>
    %12 = arith.truncf %11 : vector<96x512xf32> to vector<96x512xbf16>
    %c0_4 = arith.constant 0 : index
    %c0_5 = arith.constant 0 : index
    %13 = vector.load %arg3[%c0_4, %c0_5] : memref<32x96xbf16, #tpu.memory_space<vmem>>, vector<32x96xbf16>
    %cst_6 = arith.constant dense<0.000000e+00> : vector<32x512xf32>
    %14 = tpu.matmul %13, %12, %cst_6 {dimension_numbers = #tpu.dot_dimension_numbers<[1], [0], [0], [1], [0, 0, 1, 1], [], []>} : vector<32x96xbf16>, vector<96x512xbf16>, vector<32x512xf32> -> vector<32x512xf32>
    %c0_7 = arith.constant 0 : index
    %c0_8 = arith.constant 0 : index
    %15 = vector.load %arg4[%c0_7, %c0_8] : memref<32x1xf32, #tpu.memory_space<vmem>>, vector<32x1xf32>
    %16 = vector.broadcast %15 : vector<32x1xf32> to vector<32x512xf32>
    %17 = arith.addf %14, %16 : vector<32x512xf32>
    %18 = arith.addf %17, %0 : vector<32x512xf32>
    %cst_9 = arith.constant 0.000000e+00 : f32
    %19 = vector.shape_cast %3 : vector<1x512xi1> to vector<1x512xi1>
    %20 = vector.broadcast %19 : vector<1x512xi1> to vector<32x512xi1>
    %21 = vector.broadcast %cst_9 : f32 to vector<32x512xf32>
    %22 = arith.select %20, %18, %21 : vector<32x512xi1>, vector<32x512xf32>
    %cst_10 = arith.constant 0.000000e+00 : f32
    %23 = vector.broadcast %cst_10 : f32 to vector<32x512xf32>
    %24 = arith.cmpf oge, %22, %23 : vector<32x512xf32>
    %cst_11 = arith.constant 1.000000e-01 : f32
    %25 = vector.broadcast %cst_11 : f32 to vector<32x512xf32>
    %26 = arith.mulf %25, %22 : vector<32x512xf32>
    %27 = arith.select %24, %22, %26 : vector<32x512xi1>, vector<32x512xf32>
    %c3_i32 = arith.constant 3 : i32
    %28 = tpu.dynamic_rotate %27 by %c3_i32 dim 1 : vector<32x512xf32>, i32 -> vector<32x512xf32>
    %c509_i32 = arith.constant 509 : i32
    %29 = tpu.dynamic_rotate %27 by %c509_i32 dim 1 : vector<32x512xf32>, i32 -> vector<32x512xf32>
    %30 = tpu.concatenate %28, %27, %29 in 0 : vector<32x512xf32>, vector<32x512xf32>, vector<32x512xf32> -> vector<96x512xf32>
    %31 = arith.truncf %30 : vector<96x512xf32> to vector<96x512xbf16>
    %c0_12 = arith.constant 0 : index
    %c0_13 = arith.constant 0 : index
    %32 = vector.load %arg5[%c0_12, %c0_13] : memref<32x96xbf16, #tpu.memory_space<vmem>>, vector<32x96xbf16>
    %cst_14 = arith.constant dense<0.000000e+00> : vector<32x512xf32>
    %33 = tpu.matmul %32, %31, %cst_14 {dimension_numbers = #tpu.dot_dimension_numbers<[1], [0], [0], [1], [0, 0, 1, 1], [], []>} : vector<32x96xbf16>, vector<96x512xbf16>, vector<32x512xf32> -> vector<32x512xf32>
    %c0_15 = arith.constant 0 : index
    %c0_16 = arith.constant 0 : index
    %34 = vector.load %arg6[%c0_15, %c0_16] : memref<32x1xf32, #tpu.memory_space<vmem>>, vector<32x1xf32>
    %35 = vector.broadcast %34 : vector<32x1xf32> to vector<32x512xf32>
    %36 = arith.addf %33, %35 : vector<32x512xf32>
    %37 = arith.addf %36, %22 : vector<32x512xf32>
    %cst_17 = arith.constant 0.000000e+00 : f32
    %38 = vector.shape_cast %3 : vector<1x512xi1> to vector<1x512xi1>
    %39 = vector.broadcast %38 : vector<1x512xi1> to vector<32x512xi1>
    %40 = vector.broadcast %cst_17 : f32 to vector<32x512xf32>
    %41 = arith.select %39, %37, %40 : vector<32x512xi1>, vector<32x512xf32>
    %c0_18 = arith.constant 0 : index
    %c0_19 = arith.constant 0 : index
    %42 = vector.load %arg7[%c0_18, %c0_19] : memref<32x512xf32, #tpu.memory_space<vmem>>, vector<32x512xf32>
    tpu.vector_store %arg7[%c0_18, %c0_19], %41 {strides = array<i32>} : memref<32x512xf32, #tpu.memory_space<vmem>>, vector<32x512xf32>,
    return
  }
  func.func @transform_0(%arg0: i32) -> (i32, i32) {
    %c0_i32 = arith.constant 0 : i32
    %c0_i32_0 = arith.constant 0 : i32
    return %c0_i32, %arg0 : i32, i32
  }
  func.func @transform_1(%arg0: i32) -> (i32, i32) {
    %c0_i32 = arith.constant 0 : i32
    %c0_i32_0 = arith.constant 0 : i32
    return %c0_i32, %arg0 : i32, i32
  }
  func.func @transform_2(%arg0: i32) -> (i32, i32) {
    %c0_i32 = arith.constant 0 : i32
    %c0_i32_0 = arith.constant 0 : i32
    %c0_i32_1 = arith.constant 0 : i32
    return %c0_i32, %c0_i32_0 : i32, i32
  }
  func.func @transform_3(%arg0: i32) -> (i32, i32) {
    %c0_i32 = arith.constant 0 : i32
    %c0_i32_0 = arith.constant 0 : i32
    %c0_i32_1 = arith.constant 0 : i32
    return %c0_i32, %c0_i32_0 : i32, i32
  }
  func.func @transform_4(%arg0: i32) -> (i32, i32) {
    %c0_i32 = arith.constant 0 : i32
    %c0_i32_0 = arith.constant 0 : i32
    %c0_i32_1 = arith.constant 0 : i32
    return %c0_i32, %c0_i32_0 : i32, i32
  }
  func.func @transform_5(%arg0: i32) -> (i32, i32) {
    %c0_i32 = arith.constant 0 : i32
    %c0_i32_0 = arith.constant 0 : i32
    %c0_i32_1 = arith.constant 0 : i32
    return %c0_i32, %c0_i32_0 : i32, i32
  }
  func.func @transform_6(%arg0: i32) -> (i32, i32) {
    %c0_i32 = arith.constant 0 : i32
    %c0_i32_0 = arith.constant 0 : i32
    return %c0_i32, %arg0 : i32, i32
  }
}

</mosaic_0001>

<bundles_post_ra>
// kernel: tpu_custom_call.1
= control target key start
LH: loop header
LB: loop body
LE: loop exit
PB: predicated region body
PF: predicated region fallthrough
CT: control target
= control target key end

     0   :  { %11 = vsyncpa [#allocation3], 0  ;;  %s1807_s0 = inlined_call_operand.vmem [shape: s32[1,512], index: 0, kind: input, shape index: {}]   ;;  %s1808_s1 = inlined_call_operand.hbm [shape: f32[32,512], index: 1, kind: input, shape index: {}]   ;;  %s1809_s2 = inlined_call_operand.vmem [shape: bf16[32,96], index: 2, kind: input, shape index: {}]   ;;  %s1810_s3 = inlined_call_operand.vmem [shape: f32[32,1], index: 3, kind: input, shape index: {}]   ;;  %s1811_s4 = inlined_call_operand.vmem [shape: bf16[32,96], index: 4, kind: input, shape index: {}]   ;;  %s1812_s5 = inlined_call_operand.vmem [shape: f32[32,1], index: 5, kind: input, shape index: {}]   ;;  %s1813_s6 = inlined_call_operand.hbm [shape: f32[32,512], index: 6, kind: output, shape index: {}]  }
   0x1   :  { %12 = vsyncpa [#allocation4], 0  ;;  %s1053_s21 = smov [#allocation2]   ;;  %s1005_s25 = scalar_lea.hbm %s1808_s1, 2048 }
   0x2   :  { %s20_s22 = sshll.u32 %s1053_s21, 4  ;;  %p1006_p0 = scmp.ne.s32.totalorder %s1808_s1, %s1005_s25  ;;  %s21_s22 = int_to_ptr.vmem [resolvable:$true] %s20_s22 }
   0x3   :  { %p1009_p1 = scmp.lt.u32.totalorder %s1005_s25, %s1808_s1 }
   0x5   :  { %p1011_p2 = pnand %p1009_p1, %p1006_p0 }
   0x7   :  { %1014 = shalt.err (!%p1011_p2)
}
   0x8   :  { %s1015_s30 = scalar_lea.vmem %s21_s22, 2048  ;;  %p1020_p4 = scmp.lt.s32.totalorder %s21_s22, %s21_s22 }
   0x9   :  { %p1016_p3 = scmp.ne.s32.totalorder %s21_s22, %s1015_s30  ;;  %p1021_p5 = scmp.lt.s32.totalorder %s1015_s30, %s1015_s30 }
   0xb   :  { %p1022_p6 = por %p1021_p5, %p1020_p4 }
   0xd   :  { %p1023_p7 = pnand %p1022_p6, %p1016_p3 }
   0xf   :  { %1026 = shalt.err (!%p1023_p7)
}
  0x10   :  { %s1054_s7 = smov 512   ;;  %s1055_s8 = smov 32  }
  0x11   :  { %26 = dma.hbm_to_vmem [thread:$0]  %s1808_s1, 2048, %s21_s22, [#allocation3], %s1054_s7, %s1054_s7, %s1055_s8  }
  0x12   :  { %1049 = dma.done.wait [#allocation3], 2048  }
  0x13   :  { %1050 = vsyncadd [#allocation3], 4294965248  ;;  %v1112_v0 = vld [vmem:[#allocation2 + $0x10] sm:$0xff]  ;;  %v1116_v2 = vld [vmem:[#allocation2] sm:$0xff]  ;;  %s1056_s1 = smov 1   ;;  %s1057_s11 = smov 127  }
  0x14   :  { %v1114_v1 = vld [vmem:[#allocation2 + $0x30] sm:$0xff]  ;;  %vm59_vm0 = vcmp.ge.f32.partialorder %v1112_v0, 0.0  ;;  %v75_v3 = vmul.f32 0.1, %v1112_v0  ;;  %v1122_v5 = vld [vmem:[#allocation2 + $0x20] sm:$0xff]  ;;  %vm57_vm2 = vcmp.ge.f32.partialorder %v1116_v2, 0.0 }
  0x15   :  { %vm63_vm1 = vcmp.ge.f32.partialorder %v1114_v1, 0.0  ;;  %v79_v4 = vmul.f32 0.1, %v1114_v1  ;;  %v73_v6 = vmul.f32 0.1, %v1116_v2  ;;  %v1126_v7 = vld [vmem:[#allocation2 + $0x18] sm:$0xff] }
  0x16   :  { %v1128_v8 = vld [vmem:[#allocation2 + $0x38] sm:$0xff]  ;;  %v1131_v9 = vsel %vm59_vm0, %v1112_v0, %v75_v3  ;;  %vm61_vm3 = vcmp.ge.f32.partialorder %v1122_v5, 0.0  ;;  %v77_v11 = vmul.f32 0.1, %v1122_v5  ;;  %v1138_v12 = vld [vmem:[#allocation2 + $0x8] sm:$0xff]  ;;  %vm60_vm4 = vcmp.ge.f32.partialorder %v1126_v7, 0.0 }
  0x17   :  { %v1134_v10 = vsel %vm63_vm1, %v1114_v1, %v79_v4  ;;  %v1140_v13 = vld [vmem:[#allocation2 + $0x28] sm:$0xff]  ;;  %v1147_v15 = vsel %vm57_vm2, %v1116_v2, %v73_v6  ;;  %vm64_vm5 = vcmp.ge.f32.partialorder %v1128_v8, 0.0  ;;  %v1155_v18 = vld [vmem:[#allocation2 + $0x40] sm:$0xff]  ;;  %v76_v20 = vmul.f32 0.1, %v1126_v7  ;;  %v1172_v26 = vld [vmem:[#allocation2 + $0x58] sm:$0xff] }
  0x18   :  { %v1144_v14 = vpack.i.bf16 %v1134_v10, %v1131_v9  ;;  %v1151_v16 = vld [vmem:[#allocation2 + $0x48] sm:$0xff]  ;;  %v1158_v19 = vsel %vm61_vm3, %v1122_v5, %v77_v11  ;;  %v80_v21 = vmul.f32 0.1, %v1128_v8  ;;  %vm58_vm6 = vcmp.ge.f32.partialorder %v1138_v12, 0.0  ;;  %v1163_v22 = vld [vmem:[#allocation2 + $0x60] sm:$0xff]  ;;  %v1186_v29 = vld [vmem:[#allocation2 + $0x78] sm:$0xff] }
  0x19   :  { %v1153_v17 = vld [vmem:[#allocation2 + $0x68] sm:$0xff]  ;;  %v839_v23 = vpack.i.bf16 %v1158_v19, %v1147_v15  ;;  %vm62_vm7 = vcmp.ge.f32.partialorder %v1140_v13, 0.0  ;;  %v74_v24 = vmul.f32 0.1, %v1138_v12  ;;  %v78_v25 = vmul.f32 0.1, %v1140_v13 }
  0x1a   :  { %850 = vrot.lane.b32.xlu1 %v1144_v14, %s1056_s1  ;;  %v1177_v27 = vsel %vm60_vm4, %v1126_v7, %v76_v20  ;;  %v1182_v28 = vsel %vm64_vm5, %v1128_v8, %v80_v21  ;;  %vm66_vm8 = vcmp.ge.f32.partialorder %v1151_v16, 0.0  ;;  %vm70_vm9 = vcmp.ge.f32.partialorder %v1153_v17, 0.0  ;;  %v1188_v30 = vld [vmem:[#allocation2 + $0x50] sm:$0xff]  ;;  %v234_v4 = vld [vmem:[%s1810_s3 + $0x8] sm:$0xff]  ;;  %v233_v6 = vld [vmem:[%s1810_s3] sm:$0xff] }
  0x1b   :  { %840 = vrot.lane.b32.xlu0 %v839_v23, %s1056_s1  ;;  %v854_v31 = vpack.i.bf16 %v1182_v28, %v1177_v27  ;;  %v1196_v32 = vsel %vm58_vm6, %v1138_v12, %v74_v24  ;;  %v1199_v33 = vsel %vm62_vm7, %v1140_v13, %v78_v25  ;;  %v82_v34 = vmul.f32 0.1, %v1151_v16  ;;  %v1214_v40 = vld [vmem:[#allocation2 + $0x70] sm:$0xff] }
  0x1c   :  { %v844_v35 = vpack.i.bf16 %v1199_v33, %v1196_v32  ;;  %v86_v36 = vmul.f32 0.1, %v1153_v17  ;;  %vm65_vm10 = vcmp.ge.f32.partialorder %v1155_v18, 0.0  ;;  %vm69_vm11 = vcmp.ge.f32.partialorder %v1163_v22, 0.0  ;;  %v235_v11 = vld [vmem:[%s1810_s3 + $0x10] sm:$0xff] }
  0x1d   :  { %v1209_v37 = vsel %vm66_vm8, %v1151_v16, %v82_v34  ;;  %v81_v38 = vmul.f32 0.1, %v1155_v18  ;;  %v85_v39 = vmul.f32 0.1, %v1163_v22  ;;  %vm68_vm12 = vcmp.ge.f32.partialorder %v1172_v26, 0.0 }
  0x1e   :  { %855 = vrot.lane.b32.xlu1 %v854_v31, %s1056_s1  ;;  %v1219_v41 = vsel %vm70_vm9, %v1153_v17, %v86_v36  ;;  %vm72_vm13 = vcmp.ge.f32.partialorder %v1186_v29, 0.0  ;;  %v84_v42 = vmul.f32 0.1, %v1172_v26  ;;  %v88_v43 = vmul.f32 0.1, %v1186_v29 }
  0x1f   :  { %845 = vrot.lane.b32.xlu0 %v844_v35, %s1056_s1  ;;  %v864_v44 = vpack.i.bf16 %v1219_v41, %v1209_v37  ;;  %v1228_v45 = vsel %vm65_vm10, %v1155_v18, %v81_v38  ;;  %v1231_v46 = vsel %vm69_vm11, %v1163_v22, %v85_v39  ;;  %vm67_vm14 = vcmp.ge.f32.partialorder %v1188_v30, 0.0 }
  0x20   :  { %v859_v47 = vpack.i.bf16 %v1231_v46, %v1228_v45  ;;  %v1237_v48 = vsel %vm68_vm12, %v1172_v26, %v84_v42  ;;  %v1240_v49 = vsel %vm72_vm13, %v1186_v29, %v88_v43  ;;  %vm71_vm15 = vcmp.ge.f32.partialorder %v1214_v40, 0.0 }
  0x21   :  { %v874_v50 = vpack.i.bf16 %v1240_v49, %v1237_v48  ;;  %v83_v51 = vmul.f32 0.1, %v1188_v30  ;;  %v87_v52 = vmul.f32 0.1, %v1214_v40  ;;  %v214_v56 = vpack.c.bf16 %v1199_v33, %v1196_v32 }
  0x22   :  { %865 = vrot.lane.b32.xlu1 %v864_v44, %s1056_s1  ;;  %v213_v57 = vpack.c.bf16 %v1158_v19, %v1147_v15  ;;  %v216_v58 = vpack.c.bf16 %v1182_v28, %v1177_v27  ;;  %v215_v59 = vpack.c.bf16 %v1134_v10, %v1131_v9  ;;  %v218_v60 = vpack.c.bf16 %v1219_v41, %v1209_v37 }
  0x23   :  { %860 = vrot.lane.b32.xlu0 %v859_v47, %s1056_s1  ;;  %v1250_v53 = vsel %vm67_vm14, %v1188_v30, %v83_v51  ;;  %v1253_v54 = vsel %vm71_vm15, %v1214_v40, %v87_v52  ;;  %v217_v61 = vpack.c.bf16 %v1231_v46, %v1228_v45  ;;  %v220_v62 = vpack.c.bf16 %v1240_v49, %v1237_v48 }
  0x24   :  { %v869_v55 = vpack.i.bf16 %v1253_v54, %v1250_v53  ;;  %v219_v63 = vpack.c.bf16 %v1253_v54, %v1250_v53  ;;  %v1815_v3 = vmov 0   ;;  %v1814_v20 = vlaneseq }
  0x25   :  { %306 = vmatprep.mubr.bf16.mxu0 %v1815_v3  ;;  %359 = vmatprep.mubr.bf16.mxu1 %v1815_v3  ;;  %vm267_vm2 = vcmask 785408  }
  0x26   :  { %875 = vrot.lane.b32.xlu1 %v874_v50, %s1056_s1  ;;  %919 = vset.pattern.permute.xlu0 %v1815_v3 }
  0x27   :  { %870 = vrot.lane.b32.xlu0 %v869_v55, %s1056_s1  ;;  %920 = vset.pattern.permute.xlu1 %v1815_v3 }
  0x2a   :  { %885 = vrot.lane.b32.xlu1 %v844_v35, %s1057_s11 }
  0x2b   :  { %880 = vrot.lane.b32.xlu0 %v839_v23, %s1057_s11  ;;  %v1293_v23 = vand.u32 127, %v1814_v20 }
  0x2d   :  { %vm139_vm0 = vcmp.lt.s32.totalorder %v1293_v23, 1  ;;  %vm188_vm1 = vcmp.lt.s32.totalorder %v1293_v23, 127 }
  0x2e   :  { %895 = vrot.lane.b32.xlu1 %v854_v31, %s1057_s11 }
  0x2f   :  { %890 = vrot.lane.b32.xlu0 %v1144_v14, %s1057_s11  ;;  %v236_v14 = vld [vmem:[%s1810_s3 + $0x18] sm:$0xff] }
  0x32   :  { %905 = vrot.lane.b32.xlu1 %v864_v44, %s1057_s11 }
  0x33   :  { %900 = vrot.lane.b32.xlu0 %v859_v47, %s1057_s11 }
  0x36   :  { %915 = vrot.lane.b32.xlu1 %v874_v50, %s1057_s11 }
  0x37   :  { %910 = vrot.lane.b32.xlu0 %v869_v55, %s1057_s11 }
  0x3a   :  { %244 = vperm.xlu1 %920, %v234_v4  }
  0x3b   :  { %239 = vperm.xlu0 %919, %v233_v6  }
  0x3e   :  { %249 = vperm.xlu1 %920, %v235_v11  }
  0x3f   :  { %254 = vperm.xlu0 %919, %v236_v14  }
  0x8c   :  { %v851_v21 = vpop.permute.xlu1 %850 }
  0x8d   :  { %v841_v24 = vpop.permute.xlu0 %840  ;;  %v853_v31 = vunpack.i.h.bf16 %v851_v21  ;;  %v852_v34 = vunpack.i.l.bf16 %v851_v21 }
  0x8e   :  { %v843_v38 = vunpack.i.h.bf16 %v841_v24  ;;  %v842_v39 = vunpack.i.l.bf16 %v841_v24 }
  0x90   :  { %v856_v25 = vpop.permute.xlu1 %855 }
  0x91   :  { %v858_v35 = vunpack.i.h.bf16 %v856_v25  ;;  %v857_v36 = vunpack.i.l.bf16 %v856_v25  ;;  %v846_v42 = vpop.permute.xlu0 %845 }
  0x92   :  { %v848_v43 = vunpack.i.h.bf16 %v846_v42  ;;  %v847_v44 = vunpack.i.l.bf16 %v846_v42 }
  0x93   :  { %v140_v47 = vsel %vm139_vm0, %v852_v34, %v857_v36  ;;  %v141_v50 = vsel %vm139_vm0, %v853_v31, %v858_v35  ;;  %v152_v55 = vsel %vm139_vm0, %v857_v36, %v842_v39  ;;  %v153_v4 = vsel %vm139_vm0, %v858_v35, %v843_v38 }
  0x94   :  { %v866_v51 = vpop.permute.xlu1 %865  ;;  %v208_v52 = vpack.c.bf16 %v141_v50, %v140_v47  ;;  %v148_v14 = vsel %vm139_vm0, %v842_v39, %v847_v44  ;;  %v149_v21 = vsel %vm139_vm0, %v843_v38, %v848_v43  ;;  %v205_v42 = vpack.c.bf16 %v153_v4, %v152_v55 }
  0x95   :  { %v868_v6 = vunpack.i.h.bf16 %v866_v51  ;;  %v867_v11 = vunpack.i.l.bf16 %v866_v51  ;;  %v861_v24 = vpop.permute.xlu0 %860  ;;  %v206_v25 = vpack.c.bf16 %v149_v21, %v148_v14  ;;  %v144_v47 = vsel %vm139_vm0, %v847_v44, %v852_v34 }
  0x96   :  { %327 = vmatprep.subr.bf16.mxu1 %v208_v52  ;;  %v145_v36 = vsel %vm139_vm0, %v848_v43, %v853_v31  ;;  %v863_v50 = vunpack.i.h.bf16 %v861_v24  ;;  %v862_v35 = vunpack.i.l.bf16 %v861_v24 }
  0x97   :  { %v207_v20 = vpack.c.bf16 %v145_v36, %v144_v47  ;;  %274 = vmatprep.subr.bf16.mxu0 %v206_v25 }
  0x98   :  { %v876_v51 = vpop.permute.xlu1 %875  ;;  %275 = vmatpush1.bf16.msra.mxu0 %v205_v42  ;;  %v150_v38 = vsel %vm139_vm0, %v862_v35, %v867_v11  ;;  %v151_v52 = vsel %vm139_vm0, %v863_v50, %v868_v6 }
  0x99   :  { %328 = vmatpush1.bf16.msra.mxu1 %v207_v20  ;;  %v878_v39 = vunpack.i.h.bf16 %v876_v51  ;;  %v877_v3 = vunpack.i.l.bf16 %v876_v51  ;;  %v871_v55 = vpop.permute.xlu0 %870  ;;  %v210_v34 = vpack.c.bf16 %v151_v52, %v150_v38 }
  0x9a   :  { %v873_v44 = vunpack.i.h.bf16 %v871_v55  ;;  %v872_v4 = vunpack.i.l.bf16 %v871_v55 }
  0x9b   :  { %v154_v31 = vsel %vm139_vm0, %v877_v3, %v862_v35  ;;  %v155_v43 = vsel %vm139_vm0, %v878_v39, %v863_v50  ;;  %276 = vmatprep.subr.bf16.mxu0 %v210_v34 }
  0x9c   :  { %v886_v20 = vpop.permute.xlu1 %885  ;;  %v209_v14 = vpack.c.bf16 %v155_v43, %v154_v31  ;;  %v142_v21 = vsel %vm139_vm0, %v872_v4, %v877_v3  ;;  %v143_v24 = vsel %vm139_vm0, %v873_v44, %v878_v39  ;;  %v146_v47 = vsel %vm139_vm0, %v867_v11, %v872_v4 }
  0x9d   :  { %v881_v25 = vpop.permute.xlu0 %880  ;;  %v212_v42 = vpack.c.bf16 %v143_v24, %v142_v21  ;;  %v147_v36 = vsel %vm139_vm0, %v868_v6, %v873_v44  ;;  %v888_v50 = vunpack.i.h.bf16 %v886_v20  ;;  %v887_v51 = vunpack.i.l.bf16 %v886_v20 }
  0x9e   :  { %277 = vmatpush1.bf16.msra.mxu0 %v209_v14  ;;  %v211_v35 = vpack.c.bf16 %v147_v36, %v146_v47  ;;  %v883_v3 = vunpack.i.h.bf16 %v881_v25  ;;  %v882_v38 = vunpack.i.l.bf16 %v881_v25 }
  0x9f   :  { %278 = vmatprep.subr.bf16.mxu0 %v214_v56  ;;  %329 = vmatprep.subr.bf16.mxu1 %v212_v42 }
  0xa0   :  { %v896_v39 = vpop.permute.xlu1 %895  ;;  %330 = vmatpush1.bf16.msra.mxu1 %v211_v35  ;;  %v197_v15 = vsel %vm188_vm1, %v882_v38, %v887_v51  ;;  %v198_v19 = vsel %vm188_vm1, %v883_v3, %v888_v50  ;;  %v1001_v35 = vld [vmem:[%s1809_s2] sm:$0xff]  }
  0xa1   :  { %v898_v52 = vunpack.i.h.bf16 %v896_v39  ;;  %v897_v55 = vunpack.i.l.bf16 %v896_v39  ;;  %v891_v11 = vpop.permute.xlu0 %890  ;;  %331 = vmatprep.subr.bf16.mxu1 %v216_v58  ;;  %v221_v58 = vpack.c.bf16 %v198_v19, %v197_v15 }
  0xa2   :  { %279 = vmatpush1.bf16.msra.mxu0 %v213_v57  ;;  %v893_v32 = vunpack.i.h.bf16 %v891_v11  ;;  %v892_v33 = vunpack.i.l.bf16 %v891_v11 }
  0xa3   :  { %280 = vmatprep.subr.bf16.mxu0 %v218_v60  ;;  %v201_v6 = vsel %vm188_vm1, %v897_v55, %v882_v38  ;;  %v202_v34 = vsel %vm188_vm1, %v898_v52, %v883_v3  ;;  %v55_v3 = vld [vmem:[%s1807_s0] sm:$0xf]  ;;  %v1818_v38 = vlaneseq  ;;  %s1059_s0 = smov 3  }
  0xa4   :  { %v906_v56 = vpop.permute.xlu1 %905  ;;  %332 = vmatpush1.bf16.msra.mxu1 %v215_v59  ;;  %v193_v27 = vsel %vm188_vm1, %v887_v51, %v892_v33  ;;  %v194_v28 = vsel %vm188_vm1, %v888_v50, %v893_v32  ;;  %v224_v57 = vpack.c.bf16 %v202_v34, %v201_v6  ;;  %v189_v9 = vsel %vm188_vm1, %v892_v33, %v897_v55  ;;  %v1002_v51 = vld [vmem:[%s1809_s2 + $0x8] sm:$0xff]   ;;  %s1060_s2 = smov 125  }
  0xa5   :  { %v901_v37 = vpop.permute.xlu0 %900  ;;  %333 = vmatprep.subr.bf16.mxu1 %v220_v62  ;;  %v222_v41 = vpack.c.bf16 %v194_v28, %v193_v27  ;;  %v190_v10 = vsel %vm188_vm1, %v893_v32, %v898_v52  ;;  %v908_v59 = vunpack.i.h.bf16 %v906_v56  ;;  %v907_v60 = vunpack.i.l.bf16 %v906_v56 }
  0xa6   :  { %281 = vmatpush1.bf16.msra.mxu0 %v217_v61  ;;  %v903_v44 = vunpack.i.h.bf16 %v901_v37  ;;  %v902_v4 = vunpack.i.l.bf16 %v901_v37  ;;  %v223_v61 = vpack.c.bf16 %v190_v10, %v189_v9  ;;  %v1817_v50 = vmov 0  }
  0xa7   :  { %282 = vmatprep.subr.bf16.mxu0 %v222_v41  ;;  %v398_v39 = vshrl.u32 %v1818_v38, 7  ;;  %vm56_vm3 = vcmp.lt.s32.totalorder %v55_v3, 200 }
  0xa8   :  { %v916_v45 = vpop.permute.xlu1 %915  ;;  %334 = vmatpush1.bf16.msra.mxu1 %v219_v63  ;;  %v199_v21 = vsel %vm188_vm1, %v902_v4, %v907_v60  ;;  %v200_v53 = vsel %vm188_vm1, %v903_v44, %v908_v59  ;;  %v396_v11 = vsel %vm56_vm3, 1, %v1817_v50 }
  0xa9   :  { %v918_v46 = vunpack.i.h.bf16 %v916_v45  ;;  %v917_v48 = vunpack.i.l.bf16 %v916_v45  ;;  %v911_v49 = vpop.permute.xlu0 %910  ;;  %335 = vmatprep.subr.bf16.mxu1 %v224_v57  ;;  %v225_v36 = vpack.c.bf16 %v200_v53, %v199_v21  ;;  %v399_v52 = vsub.s32 0, %v398_v39 }
  0xaa   :  { %283 = vmatpush1.bf16.msra.mxu0 %v221_v58  ;;  %v913_v62 = vunpack.i.h.bf16 %v911_v49  ;;  %v912_v31 = vunpack.i.l.bf16 %v911_v49  ;;  %v407_v55 = vsub.s32 2, %v398_v39  ;;  %v403_v32 = vsub.s32 1, %v398_v39 }
  0xab   :  { %v203_v43 = vsel %vm188_vm1, %v917_v48, %v902_v4  ;;  %v204_v20 = vsel %vm188_vm1, %v918_v46, %v903_v44  ;;  %v411_v33 = vsub.s32 3, %v398_v39  ;;  %v1404_v56 = vrot.slane %v396_v11, %v399_v52 }
  0xac   :  { %v228_v14 = vpack.c.bf16 %v204_v20, %v203_v43  ;;  %336 = vmatpush1.bf16.msra.mxu1 %v223_v61  ;;  %v195_v54 = vsel %vm188_vm1, %v907_v60, %v912_v31  ;;  %v196_v63 = vsel %vm188_vm1, %v908_v59, %v913_v62  ;;  %v191_v24 = vsel %vm188_vm1, %v912_v31, %v917_v48 }
  0xad   :  { %v192_v25 = vsel %vm188_vm1, %v913_v62, %v918_v46  ;;  %v226_v42 = vpack.c.bf16 %v196_v63, %v195_v54  ;;  %v1406_v6 = vrot.slane %v396_v11, %v407_v55  ;;  %v1408_v15 = vrot.slane %v396_v11, %v403_v32 }
  0xae   :  { %337 = vmatprep.subr.bf16.mxu1 %v228_v14  ;;  %v227_v47 = vpack.c.bf16 %v192_v25, %v191_v24  ;;  %v1410_v19 = vrot.slane %v396_v11, %v411_v33  ;;  %vm413_vm4 = vcmp.eq.s32.totalorder %v1404_v56, 1 }
  0xaf   :  { %284 = vmatprep.subr.bf16.mxu0 %v226_v42  ;;  %vm415_vm5 = vcmp.eq.s32.totalorder %v1406_v6, 1  ;;  %vm414_vm6 = vcmp.eq.s32.totalorder %v1408_v15, 1 }
  0xb0   :  { %285 = vmatpush1.bf16.msra.mxu0 %v225_v36  ;;  %338 = vmatpush1.bf16.msra.mxu1 %v227_v47  ;;  %vm416_vm7 = vcmp.eq.s32.totalorder %v1410_v19, 1 }
  0xb3   :  { %820 = vmatmul.mubr.msk.bf16.vlgmr.msra.gmra.mrb[0].mxu0 %vm267_vm2, %v1001_v35  ;;  %822 = vmatmul.mubr.msk.bf16.vlgmr.msra.gmra.mrb[0].mxu1 %vm267_vm2, %v1001_v35 }
  0xb4   :  { %316 = vmatprep.mubr.bf16.mxu0 %v1817_v50  ;;  %369 = vmatprep.mubr.bf16.mxu1 %v1817_v50 }
  0xb9   :  { %v245_v27 = vpop.permute.xlu1 %244 }
  0xba   :  { %v240_v34 = vpop.permute.xlu0 %239 }
  0xbb   :  { %821 = vmatmul.mubr.msk.bf16.gmra.mrb[4].mxu0 %vm267_vm2, %v1002_v51  ;;  %823 = vmatmul.mubr.msk.bf16.gmra.mrb[4].mxu1 %vm267_vm2, %v1002_v51 }
  0xbc   :  { %679 = vmatprep.mubr.bf16.mxu0 %v1817_v50  ;;  %732 = vmatprep.mubr.bf16.mxu1 %v1817_v50 }
  0xbd   :  { %v250_v63 = vpop.permute.xlu1 %249 }
  0xbe   :  { %v255_v24 = vpop.permute.xlu0 %254 }
 0x186   :  { %v308_v28 = vpop.f32.mrb[0].mxu0  ;;  %v361_v37 = vpop.f32.mrb[0].mxu1 }
 0x187   :  { %v309_v41 = vadd.f32 %v308_v28, %v240_v34  ;;  %v362_v57 = vadd.f32 %v361_v37, %v240_v34  ;;  %v310_v58 = vpop.f32.mrb[1].mxu0  ;;  %v363_v9 = vpop.f32.mrb[1].mxu1 }
 0x188   :  { %v311_v10 = vadd.f32 %v310_v58, %v240_v34  ;;  %v364_v59 = vadd.f32 %v363_v9, %v240_v34  ;;  %v312_v60 = vpop.f32.mrb[2].mxu0  ;;  %v365_v44 = vpop.f32.mrb[2].mxu1 }
 0x189   :  { %v380_v4 = vadd.f32 %v309_v41, %v1116_v2  ;;  %v382_v45 = vadd.f32 %v362_v57, %v1112_v0  ;;  %v313_v46 = vadd.f32 %v312_v60, %v245_v27  ;;  %v366_v48 = vadd.f32 %v365_v44, %v245_v27  ;;  %v314_v49 = vpop.f32.mrb[3].mxu0  ;;  %v367_v61 = vpop.f32.mrb[3].mxu1 }
 0x18a   :  { %v381_v62 = vadd.f32 %v311_v10, %v1138_v12  ;;  %v383_v31 = vadd.f32 %v364_v59, %v1126_v7  ;;  %v315_v43 = vadd.f32 %v314_v49, %v245_v27  ;;  %v368_v20 = vadd.f32 %v367_v61, %v245_v27 }
 0x18b   :  { %v1422_v14 = vsel %vm413_vm4, %v380_v4, 0.0  ;;  %v1426_v21 = vsel %vm415_vm5, %v382_v45, 0.0  ;;  %v384_v0 = vadd.f32 %v313_v46, %v1122_v5  ;;  %v386_v2 = vadd.f32 %v366_v48, %v1114_v1 }
 0x18c   :  { %v1432_v53 = vsel %vm414_vm6, %v381_v62, 0.0  ;;  %v1436_v7 = vsel %vm416_vm7, %v383_v31, 0.0  ;;  %v449_v12 = vmul.f32 0.1, %v1422_v14  ;;  %v1444_v5 = vmul.f32 0.1, %v1426_v21 }
 0x18d   :  { %v1441_v54 = vsel %vm413_vm4, %v384_v0, 0.0  ;;  %v450_v1 = vmul.f32 0.1, %v1432_v53  ;;  %v385_v25 = vadd.f32 %v315_v43, %v1140_v13  ;;  %v387_v42 = vadd.f32 %v368_v20, %v1128_v8 }
 0x18e   :  { %v318_v47 = vpop.f32.mrb[4].mxu0  ;;  %v371_v36 = vpop.f32.mrb[4].mxu1  ;;  %v1450_v35 = vmul.f32 0.1, %v1436_v7  ;;  %v1454_v51 = vsel %vm415_vm5, %v386_v2, 0.0  ;;  %vm433_vm8 = vcmp.ge.f32.partialorder %v1422_v14, 0.0 }
 0x18f   :  { %v319_v3 = vadd.f32 %v318_v47, %v250_v63  ;;  %v372_v38 = vadd.f32 %v371_v36, %v250_v63  ;;  %v320_v39 = vpop.f32.mrb[5].mxu0  ;;  %v373_v52 = vpop.f32.mrb[5].mxu1  ;;  %v453_v55 = vmul.f32 0.1, %v1441_v54  ;;  %v1460_v8 = vsel %vm414_vm6, %v385_v25, 0.0 }
 0x190   :  { %v321_v11 = vadd.f32 %v320_v39, %v250_v63  ;;  %v374_v32 = vadd.f32 %v373_v52, %v250_v63  ;;  %v322_v13 = vpop.f32.mrb[6].mxu0  ;;  %v375_v33 = vpop.f32.mrb[6].mxu1  ;;  %v1464_v34 = vsel %vm416_vm7, %v387_v42, 0.0  ;;  %vm437_vm9 = vcmp.ge.f32.partialorder %v1441_v54, 0.0 }
 0x191   :  { %v388_v27 = vadd.f32 %v319_v3, %v1155_v18  ;;  %v390_v28 = vadd.f32 %v372_v38, %v1188_v30  ;;  %v324_v37 = vpop.f32.mrb[7].mxu0  ;;  %v377_v41 = vpop.f32.mrb[7].mxu1  ;;  %v323_v58 = vadd.f32 %v322_v13, %v255_v24  ;;  %v376_v9 = vadd.f32 %v375_v33, %v255_v24 }
 0x192   :  { %v389_v57 = vadd.f32 %v321_v11, %v1151_v16  ;;  %v325_v60 = vadd.f32 %v324_v37, %v255_v24  ;;  %v378_v18 = vadd.f32 %v377_v41, %v255_v24  ;;  %v455_v30 = vmul.f32 0.1, %v1454_v51 }
 0x193   :  { %v1472_v10 = vsel %vm413_vm4, %v388_v27, 0.0  ;;  %v1476_v59 = vsel %vm415_vm5, %v390_v28, 0.0  ;;  %v454_v44 = vmul.f32 0.1, %v1460_v8  ;;  %v456_v16 = vmul.f32 0.1, %v1464_v34 }
 0x194   :  { %v391_v4 = vadd.f32 %v374_v32, %v1172_v26  ;;  %v457_v45 = vmul.f32 0.1, %v1472_v10  ;;  %v459_v46 = vmul.f32 0.1, %v1476_v59  ;;  %v392_v48 = vadd.f32 %v323_v58, %v1163_v22 }
 0x195   :  { %v394_v49 = vadd.f32 %v376_v9, %v1214_v40  ;;  %v393_v61 = vadd.f32 %v325_v60, %v1153_v17  ;;  %v395_v62 = vadd.f32 %v378_v18, %v1186_v29  ;;  %v1491_v31 = vsel %vm433_vm8, %v1422_v14, %v449_v12 }
 0x196   :  { %v1496_v26 = vsel %vm437_vm9, %v1441_v54, %v453_v55  ;;  %v1500_v43 = vsel %vm414_vm6, %v389_v57, 0.0  ;;  %v1504_v22 = vsel %vm413_vm4, %v392_v48, 0.0  ;;  %vm434_vm10 = vcmp.ge.f32.partialorder %v1432_v53, 0.0  ;;  %v607_v48 = vld [vmem:[%s1812_s5] sm:$0xff] }
 0x197   :  { %v1508_v17 = vpack.i.bf16 %v1496_v26, %v1491_v31  ;;  %v1513_v29 = vsel %vm416_vm7, %v391_v4, 0.0  ;;  %v461_v40 = vmul.f32 0.1, %v1504_v22  ;;  %v1518_v20 = vsel %vm415_vm5, %v394_v49, 0.0  ;;  %v608_v49 = vld [vmem:[%s1812_s5 + $0x8] sm:$0xff] }
 0x198   :  { %v1522_v0 = vsel %vm414_vm6, %v393_v61, 0.0  ;;  %v1527_v12 = vsel %vm416_vm7, %v395_v62, 0.0  ;;  %vm438_vm11 = vcmp.ge.f32.partialorder %v1460_v8, 0.0  ;;  %v1533_v63 = vsel %vm434_vm10, %v1432_v53, %v450_v1  ;;  %v609_v61 = vld [vmem:[%s1812_s5 + $0x10] sm:$0xff]  ;;  %v610_v62 = vld [vmem:[%s1812_s5 + $0x18] sm:$0xff] }
 0x199   :  { %v462_v2 = vmul.f32 0.1, %v1522_v0  ;;  %922 = vrot.lane.b32.xlu1 %v1508_v17, %s1059_s0  ;;  %v1536_v24 = vsel %vm438_vm11, %v1460_v8, %v454_v44  ;;  %vm435_vm12 = vcmp.ge.f32.partialorder %v1426_v21, 0.0  ;;  %vm439_vm13 = vcmp.ge.f32.partialorder %v1454_v51, 0.0 }
 0x19a   :  { %vm436_vm14 = vcmp.ge.f32.partialorder %v1436_v7, 0.0  ;;  %v931_v25 = vpack.i.bf16 %v1536_v24, %v1533_v63  ;;  %v1545_v42 = vsel %vm435_vm12, %v1426_v21, %v1444_v5  ;;  %v1548_v47 = vsel %vm439_vm13, %v1454_v51, %v455_v30 }
 0x19b   :  { %vm440_vm15 = vcmp.ge.f32.partialorder %v1464_v34, 0.0  ;;  %v458_v1 = vmul.f32 0.1, %v1500_v43  ;;  %v926_v36 = vpack.i.bf16 %v1548_v47, %v1545_v42  ;;  %vm441_vm0 = vcmp.ge.f32.partialorder %v1472_v10, 0.0 }
 0x19c   :  { %v1555_v3 = vsel %vm440_vm15, %v1464_v34, %v456_v16  ;;  %v463_v38 = vmul.f32 0.1, %v1518_v20  ;;  %v464_v5 = vmul.f32 0.1, %v1527_v12  ;;  %932 = vrot.lane.b32.xlu0 %v931_v25, %s1059_s0  ;;  %vm445_vm1 = vcmp.ge.f32.partialorder %v1504_v22, 0.0 }
 0x19d   :  { %vm442_vm3 = vcmp.ge.f32.partialorder %v1500_v43, 0.0  ;;  %927 = vrot.lane.b32.xlu1 %v926_v36, %s1059_s0  ;;  %v1566_v39 = vsel %vm436_vm14, %v1436_v7, %v1450_v35  ;;  %v1569_v52 = vsel %vm441_vm0, %v1472_v10, %v457_v45  ;;  %v1572_v55 = vsel %vm445_vm1, %v1504_v22, %v461_v40 }
 0x19e   :  { %vm446_vm8 = vcmp.ge.f32.partialorder %v1522_v0, 0.0  ;;  %v936_v11 = vpack.i.bf16 %v1555_v3, %v1566_v39  ;;  %v941_v32 = vpack.i.bf16 %v1572_v55, %v1569_v52  ;;  %vm447_vm9 = vcmp.ge.f32.partialorder %v1518_v20, 0.0 }
 0x19f   :  { %v1580_v13 = vsel %vm446_vm8, %v1522_v0, %v462_v2  ;;  %v460_v35 = vmul.f32 0.1, %v1513_v29  ;;  %v1585_v33 = vsel %vm442_vm3, %v1500_v43, %v458_v1  ;;  %vm443_vm10 = vcmp.ge.f32.partialorder %v1476_v59, 0.0 }
 0x1a0   :  { %vm448_vm11 = vcmp.ge.f32.partialorder %v1527_v12, 0.0  ;;  %937 = vrot.lane.b32.xlu0 %v936_v11, %s1059_s0  ;;  %v956_v27 = vpack.i.bf16 %v1580_v13, %v1585_v33  ;;  %v1593_v28 = vsel %vm447_vm9, %v1518_v20, %v463_v38  ;;  %vm444_vm12 = vcmp.ge.f32.partialorder %v1513_v29, 0.0 }
 0x1a1   :  { %942 = vrot.lane.b32.xlu1 %v941_v32, %s1059_s0  ;;  %v1598_v37 = vsel %vm448_vm11, %v1527_v12, %v464_v5  ;;  %v1601_v41 = vsel %vm443_vm10, %v1476_v59, %v459_v46  ;;  %v1606_v58 = vsel %vm444_vm12, %v1513_v29, %v460_v35  ;;  %v588_v9 = vpack.c.bf16 %v1536_v24, %v1533_v63 }
 0x1a2   :  { %v946_v57 = vpack.i.bf16 %v1593_v28, %v1601_v41  ;;  %v590_v60 = vpack.c.bf16 %v1555_v3, %v1566_v39  ;;  %v587_v18 = vpack.c.bf16 %v1496_v26, %v1491_v31  ;;  %v961_v46 = vpack.i.bf16 %v1598_v37, %v1606_v58 }
 0x1a3   :  { %vm513_vm13 = vcmp.lt.s32.totalorder %v1293_v23, 3  ;;  %vm562_vm14 = vcmp.lt.s32.totalorder %v1293_v23, 125  ;;  %v1819_v3 = vpack.c.bf16 %v1580_v13, %v1585_v33  ;;  %v1820_v39 = vpack.c.bf16 %v1548_v47, %v1545_v42  ;;  %v1004_v23 = vld [vmem:[%s1811_s4 + $0x8] sm:$0xff]  }
 0x1a4   :  { %957 = vrot.lane.b32.xlu0 %v956_v27, %s1059_s0 }
 0x1a5   :  { %947 = vrot.lane.b32.xlu1 %v946_v57, %s1059_s0 }
 0x1a8   :  { %962 = vrot.lane.b32.xlu0 %v961_v46, %s1059_s0 }
 0x1a9   :  { %952 = vrot.lane.b32.xlu1 %v1508_v17, %s1060_s2 }
 0x1ac   :  { %967 = vrot.lane.b32.xlu0 %v931_v25, %s1060_s2 }
 0x1ad   :  { %972 = vrot.lane.b32.xlu1 %v926_v36, %s1060_s2 }
 0x1b0   :  { %977 = vrot.lane.b32.xlu0 %v936_v11, %s1060_s2 }
 0x1b1   :  { %982 = vrot.lane.b32.xlu1 %v941_v32, %s1060_s2 }
 0x1b4   :  { %992 = vrot.lane.b32.xlu0 %v956_v27, %s1060_s2 }
 0x1b5   :  { %987 = vrot.lane.b32.xlu1 %v946_v57, %s1060_s2 }
 0x1b8   :  { %997 = vrot.lane.b32.xlu0 %v961_v46, %s1060_s2 }
 0x1b9   :  { %613 = vperm.xlu1 %920, %v607_v48  }
 0x1bc   :  { %618 = vperm.xlu0 %919, %v608_v49  }
 0x1bd   :  { %623 = vperm.xlu1 %920, %v609_v61  }
 0x1c0   :  { %628 = vperm.xlu0 %919, %v610_v62  }
 0x20b   :  { %v923_v17 = vpop.permute.xlu1 %922 }
 0x20c   :  { %v925_v40 = vunpack.i.h.bf16 %v923_v17  ;;  %v924_v2 = vunpack.i.l.bf16 %v923_v17 }
 0x20e   :  { %v933_v25 = vpop.permute.xlu0 %932 }
 0x20f   :  { %v935_v1 = vunpack.i.h.bf16 %v933_v25  ;;  %v934_v36 = vunpack.i.l.bf16 %v933_v25  ;;  %v928_v38 = vpop.permute.xlu1 %927 }
 0x210   :  { %v930_v5 = vunpack.i.h.bf16 %v928_v38  ;;  %v929_v11 = vunpack.i.l.bf16 %v928_v38 }
 0x211   :  { %v522_v32 = vsel %vm513_vm13, %v924_v2, %v934_v36  ;;  %v523_v35 = vsel %vm513_vm13, %v925_v40, %v935_v1 }
 0x212   :  { %v938_v27 = vpop.permute.xlu0 %937  ;;  %v580_v57 = vpack.c.bf16 %v523_v35, %v522_v32  ;;  %v519_v61 = vsel %vm513_vm13, %v935_v1, %v930_v5  ;;  %v518_v62 = vsel %vm513_vm13, %v934_v36, %v929_v11 }
 0x213   :  { %v940_v46 = vunpack.i.h.bf16 %v938_v27  ;;  %v939_v48 = vunpack.i.l.bf16 %v938_v27  ;;  %v943_v49 = vpop.permute.xlu1 %942  ;;  %v581_v16 = vpack.c.bf16 %v519_v61, %v518_v62 }
 0x214   :  { %647 = vmatprep.subr.bf16.mxu0 %v580_v57  ;;  %v945_v17 = vunpack.i.h.bf16 %v943_v49  ;;  %v944_v25 = vunpack.i.l.bf16 %v943_v49 }
 0x215   :  { %v526_v38 = vsel %vm513_vm13, %v939_v48, %v924_v2  ;;  %v527_v45 = vsel %vm513_vm13, %v940_v46, %v925_v40  ;;  %v514_v32 = vsel %vm513_vm13, %v929_v11, %v939_v48  ;;  %v515_v35 = vsel %vm513_vm13, %v930_v5, %v940_v46 }
 0x216   :  { %v579_v27 = vpack.c.bf16 %v527_v45, %v526_v38  ;;  %v958_v1 = vpop.permute.xlu0 %957  ;;  %v582_v4 = vpack.c.bf16 %v515_v35, %v514_v32 }
 0x217   :  { %v960_v36 = vunpack.i.h.bf16 %v958_v1  ;;  %v959_v57 = vunpack.i.l.bf16 %v958_v1  ;;  %v948_v44 = vpop.permute.xlu1 %947 }
 0x218   :  { %648 = vmatpush1.bf16.msra.mxu0 %v579_v27  ;;  %700 = vmatprep.subr.bf16.mxu1 %v582_v4  ;;  %v950_v49 = vunpack.i.h.bf16 %v948_v44  ;;  %v949_v2 = vunpack.i.l.bf16 %v948_v44 }
 0x219   :  { %701 = vmatpush1.bf16.msra.mxu1 %v581_v16  ;;  %v524_v40 = vsel %vm513_vm13, %v944_v25, %v959_v57  ;;  %v525_v11 = vsel %vm513_vm13, %v945_v17, %v960_v36 }
 0x21a   :  { %v963_v48 = vpop.permute.xlu0 %962  ;;  %v584_v5 = vpack.c.bf16 %v525_v11, %v524_v40  ;;  %v521_v61 = vsel %vm513_vm13, %v960_v36, %v950_v49  ;;  %v520_v4 = vsel %vm513_vm13, %v959_v57, %v949_v2 }
 0x21b   :  { %v965_v45 = vunpack.i.h.bf16 %v963_v48  ;;  %v964_v46 = vunpack.i.l.bf16 %v963_v48  ;;  %v953_v38 = vpop.permute.xlu1 %952  ;;  %v585_v36 = vpack.c.bf16 %v521_v61, %v520_v4 }
 0x21c   :  { %649 = vmatprep.subr.bf16.mxu0 %v584_v5  ;;  %v955_v48 = vunpack.i.h.bf16 %v953_v38 }
 0x21d   :  { %v528_v44 = vsel %vm513_vm13, %v964_v46, %v944_v25  ;;  %v529_v16 = vsel %vm513_vm13, %v965_v45, %v945_v17  ;;  %v516_v62 = vsel %vm513_vm13, %v949_v2, %v964_v46  ;;  %v517_v32 = vsel %vm513_vm13, %v950_v49, %v965_v45 }
 0x21e   :  { %v583_v35 = vpack.c.bf16 %v529_v16, %v528_v44  ;;  %v968_v27 = vpop.permute.xlu0 %967  ;;  %v586_v1 = vpack.c.bf16 %v517_v32, %v516_v62  ;;  %v954_v25 = vunpack.i.l.bf16 %v953_v38  ;;  %v1822_v44 = vpack.c.bf16 %v1572_v55, %v1569_v52 }
 0x21f   :  { %v973_v40 = vpop.permute.xlu1 %972  ;;  %v970_v5 = vunpack.i.h.bf16 %v968_v27  ;;  %v969_v30 = vunpack.i.l.bf16 %v968_v27  ;;  %v1823_v32 = vpack.c.bf16 %v1593_v28, %v1601_v41 }
 0x220   :  { %650 = vmatpush1.bf16.msra.mxu0 %v583_v35  ;;  %702 = vmatprep.subr.bf16.mxu1 %v586_v1  ;;  %v975_v57 = vunpack.i.h.bf16 %v973_v40  ;;  %v974_v11 = vunpack.i.l.bf16 %v973_v40 }
 0x221   :  { %651 = vmatprep.subr.bf16.mxu0 %v588_v9  ;;  %703 = vmatpush1.bf16.msra.mxu1 %v585_v36  ;;  %v571_v63 = vsel %vm562_vm14, %v954_v25, %v969_v30  ;;  %v572_v24 = vsel %vm562_vm14, %v955_v48, %v970_v5 }
 0x222   :  { %v978_v17 = vpop.permute.xlu0 %977  ;;  %704 = vmatprep.subr.bf16.mxu1 %v590_v60  ;;  %v567_v46 = vsel %vm562_vm14, %v969_v30, %v974_v11  ;;  %v568_v38 = vsel %vm562_vm14, %v970_v5, %v975_v57  ;;  %v595_v62 = vpack.c.bf16 %v572_v24, %v571_v63 }
 0x223   :  { %v980_v49 = vunpack.i.h.bf16 %v978_v17  ;;  %v979_v2 = vunpack.i.l.bf16 %v978_v17  ;;  %v983_v45 = vpop.permute.xlu1 %982  ;;  %v596_v30 = vpack.c.bf16 %v568_v38, %v567_v46 }
 0x224   :  { %652 = vmatpush1.bf16.msra.mxu0 %v587_v18  ;;  %v985_v60 = vunpack.i.h.bf16 %v983_v45  ;;  %v984_v31 = vunpack.i.l.bf16 %v983_v45  ;;  %v1821_v18 = vpack.c.bf16 %v1598_v37, %v1606_v58 }
 0x225   :  { %653 = vmatprep.subr.bf16.mxu0 %v1819_v3  ;;  %705 = vmatpush1.bf16.msra.mxu1 %v1820_v39  ;;  %v575_v9 = vsel %vm562_vm14, %v979_v2, %v954_v25  ;;  %v576_v61 = vsel %vm562_vm14, %v980_v49, %v955_v48  ;;  %v563_v13 = vsel %vm562_vm14, %v974_v11, %v979_v2  ;;  %v1003_v2 = vld [vmem:[%s1811_s4] sm:$0xff]   ;;  %s1061_s4 = smov [#allocation5]  }
 0x226   :  { %v993_v26 = vpop.permute.xlu0 %992  ;;  %706 = vmatprep.subr.bf16.mxu1 %v1821_v18  ;;  %v564_v42 = vsel %vm562_vm14, %v975_v57, %v980_v49  ;;  %v598_v58 = vpack.c.bf16 %v576_v61, %v575_v9  ;;  %s806_s13 = sshll.u32 %s1061_s4, 4  ;;  %s807_s13 = int_to_ptr.vmem [resolvable:$true] %s806_s13 }
 0x227   :  { %v995_v47 = vunpack.i.h.bf16 %v993_v26  ;;  %v994_v33 = vunpack.i.l.bf16 %v993_v26  ;;  %v988_v4 = vpop.permute.xlu1 %987  ;;  %v597_v35 = vpack.c.bf16 %v564_v42, %v563_v13  ;;  %s1027_s14 = scalar_lea.vmem %s807_s13, 2048  ;;  %p1032_p9 = scmp.lt.s32.totalorder %s807_s13, %s807_s13 }
 0x228   :  { %654 = vmatpush1.bf16.msra.mxu0 %v1822_v44  ;;  %v990_v16 = vunpack.i.h.bf16 %v988_v4  ;;  %v989_v37 = vunpack.i.l.bf16 %v988_v4  ;;  %p1028_p8 = scmp.ne.s32.totalorder %s807_s13, %s1027_s14  ;;  %p1033_p10 = scmp.lt.s32.totalorder %s1027_s14, %s1027_s14 }
 0x229   :  { %655 = vmatprep.subr.bf16.mxu0 %v596_v30  ;;  %707 = vmatpush1.bf16.msra.mxu1 %v1823_v32  ;;  %v573_v27 = vsel %vm562_vm14, %v984_v31, %v994_v33  ;;  %v574_v55 = vsel %vm562_vm14, %v985_v60, %v995_v47 }
 0x22a   :  { %v998_v1 = vpop.permute.xlu0 %997  ;;  %708 = vmatprep.subr.bf16.mxu1 %v598_v58  ;;  %v569_v36 = vsel %vm562_vm14, %v994_v33, %v989_v37  ;;  %v570_v52 = vsel %vm562_vm14, %v995_v47, %v990_v16  ;;  %v599_v25 = vpack.c.bf16 %v574_v55, %v573_v27  ;;  %p1034_p11 = por %p1033_p10, %p1032_p9 }
 0x22b   :  { %v1000_v40 = vunpack.i.h.bf16 %v998_v1  ;;  %v999_v57 = vunpack.i.l.bf16 %v998_v1  ;;  %v600_v11 = vpack.c.bf16 %v570_v52, %v569_v36 }
 0x22c   :  { %656 = vmatpush1.bf16.msra.mxu0 %v595_v62  ;;  %p1035_p12 = pnand %p1034_p11, %p1028_p8 }
 0x22d   :  { %v565_v28 = vsel %vm562_vm14, %v989_v37, %v999_v57  ;;  %v566_v41 = vsel %vm562_vm14, %v990_v16, %v1000_v40  ;;  %709 = vmatpush1.bf16.msra.mxu1 %v597_v35  ;;  %657 = vmatprep.subr.bf16.mxu0 %v600_v11  ;;  %v577_v48 = vsel %vm562_vm14, %v999_v57, %v984_v31 }
 0x22e   :  { %v601_v5 = vpack.c.bf16 %v566_v41, %v565_v28  ;;  %v578_v17 = vsel %vm562_vm14, %v1000_v40, %v985_v60 }
 0x22f   :  { %v602_v49 = vpack.c.bf16 %v578_v17, %v577_v48 }
 0x230   :  { %658 = vmatpush1.bf16.msra.mxu0 %v599_v25 }
 0x231   :  { %710 = vmatprep.subr.bf16.mxu1 %v602_v49 }
 0x232   :  { %711 = vmatpush1.bf16.msra.mxu1 %v601_v5 }
 0x233   :  { %826 = vmatmul.mubr.msk.bf16.vlgmr.msra.gmra.mrb[8].mxu0 %vm267_vm2, %v1003_v2 }
 0x234   :  { %689 = vmatprep.mubr.bf16.mxu0 %v1817_v50 }
 0x235   :  { %828 = vmatmul.mubr.msk.bf16.vlgmr.msra.gmra.mrb[8].mxu1 %vm267_vm2, %v1003_v2 }
 0x236   :  { %742 = vmatprep.mubr.bf16.mxu1 %v1817_v50 }
 0x238   :  { %v614_v45 = vpop.permute.xlu1 %613 }
 0x23b   :  { %827 = vmatmul.mubr.msk.bf16.gmra.mrb[12].mxu0 %vm267_vm2, %v1004_v23  ;;  %v619_v38 = vpop.permute.xlu0 %618 }
 0x23c   :  { %v624_v32 = vpop.permute.xlu1 %623 }
 0x23d   :  { %829 = vmatmul.mubr.msk.bf16.gmra.mrb[12].mxu1 %vm267_vm2, %v1004_v23 }
 0x23f   :  { %v629_v1 = vpop.permute.xlu0 %628 }
 0x306   :  { %v681_v46 = vpop.f32.mrb[8].mxu0 }
 0x307   :  { %v682_v63 = vadd.f32 %v681_v46, %v614_v45  ;;  %v683_v24 = vpop.f32.mrb[9].mxu0 }
 0x308   :  { %v684_v3 = vadd.f32 %v683_v24, %v614_v45  ;;  %v734_v39 = vpop.f32.mrb[8].mxu1  ;;  %v685_v9 = vpop.f32.mrb[10].mxu0 }
 0x309   :  { %v753_v60 = vadd.f32 %v682_v63, %v1422_v14  ;;  %v735_v31 = vadd.f32 %v734_v39, %v614_v45  ;;  %v686_v50 = vadd.f32 %v685_v9, %v619_v38  ;;  %v736_v26 = vpop.f32.mrb[9].mxu1  ;;  %v687_v18 = vpop.f32.mrb[11].mxu0 }
 0x30a   :  { %v754_v30 = vadd.f32 %v684_v3, %v1432_v53  ;;  %v737_v61 = vadd.f32 %v736_v26, %v614_v45  ;;  %v688_v13 = vadd.f32 %v687_v18, %v619_v38  ;;  %v738_v42 = vpop.f32.mrb[10].mxu1 }
 0x30b   :  { %v769_v47 = vsel %vm413_vm4, %v753_v60, 0.0  ;;  %v755_v33 = vadd.f32 %v735_v31, %v1426_v21  ;;  %v757_v4 = vadd.f32 %v686_v50, %v1441_v54  ;;  %v739_v44 = vadd.f32 %v738_v42, %v619_v38  ;;  %v740_v16 = vpop.f32.mrb[11].mxu1 }
 0x30c   :  { %785 = vst [vmem:[#allocation5] sm:$0xff] %v769_v47  ;;  %v770_v14 = vsel %vm414_vm6, %v754_v30, 0.0  ;;  %v756_v37 = vadd.f32 %v737_v61, %v1436_v7  ;;  %v758_v53 = vadd.f32 %v688_v13, %v1460_v8  ;;  %v741_v58 = vadd.f32 %v740_v16, %v619_v38 }
 0x30d   :  { %786 = vst [vmem:[#allocation5 + $0x8] sm:$0xff] %v770_v14  ;;  %v771_v62 = vsel %vm415_vm5, %v755_v33, 0.0  ;;  %v773_v21 = vsel %vm413_vm4, %v757_v4, 0.0  ;;  %v759_v54 = vadd.f32 %v739_v44, %v1454_v51 }
 0x30e   :  { %787 = vst [vmem:[#allocation5 + $0x10] sm:$0xff] %v771_v62  ;;  %789 = vst [vmem:[#allocation5 + $0x20] sm:$0xff] %v773_v21  ;;  %v772_v35 = vsel %vm416_vm7, %v756_v37, 0.0  ;;  %v774_v7 = vsel %vm414_vm6, %v758_v53, 0.0  ;;  %v760_v8 = vadd.f32 %v741_v58, %v1464_v34  ;;  %v691_v27 = vpop.f32.mrb[12].mxu0 }
 0x30f   :  { %788 = vst [vmem:[#allocation5 + $0x18] sm:$0xff] %v772_v35  ;;  %790 = vst [vmem:[#allocation5 + $0x28] sm:$0xff] %v774_v7  ;;  %v775_v36 = vsel %vm415_vm5, %v759_v54, 0.0  ;;  %v692_v52 = vadd.f32 %v691_v27, %v624_v32  ;;  %v693_v51 = vpop.f32.mrb[13].mxu0 }
 0x310   :  { %791 = vst [vmem:[#allocation5 + $0x30] sm:$0xff] %v775_v36  ;;  %v776_v55 = vsel %vm416_vm7, %v760_v8, 0.0  ;;  %v694_v40 = vadd.f32 %v693_v51, %v624_v32  ;;  %v744_v57 = vpop.f32.mrb[12].mxu1  ;;  %v695_v11 = vpop.f32.mrb[14].mxu0 }
 0x311   :  { %792 = vst [vmem:[#allocation5 + $0x38] sm:$0xff] %v776_v55  ;;  %v761_v28 = vadd.f32 %v692_v52, %v1472_v10  ;;  %v745_v34 = vadd.f32 %v744_v57, %v624_v32  ;;  %v696_v41 = vadd.f32 %v695_v11, %v629_v1  ;;  %v746_v48 = vpop.f32.mrb[13].mxu1  ;;  %v697_v25 = vpop.f32.mrb[15].mxu0 }
 0x312   :  { %v762_v5 = vadd.f32 %v694_v40, %v1500_v43  ;;  %v747_v17 = vadd.f32 %v746_v48, %v624_v32  ;;  %v698_v49 = vadd.f32 %v697_v25, %v629_v1  ;;  %v748_v2 = vpop.f32.mrb[14].mxu1 }
 0x313   :  { %v777_v23 = vsel %vm413_vm4, %v761_v28, 0.0  ;;  %v763_v45 = vadd.f32 %v745_v34, %v1476_v59  ;;  %v765_v46 = vadd.f32 %v696_v41, %v1504_v22  ;;  %v749_v38 = vadd.f32 %v748_v2, %v629_v1  ;;  %v750_v63 = vpop.f32.mrb[15].mxu1 }
 0x314   :  { %793 = vst [vmem:[#allocation5 + $0x40] sm:$0xff] %v777_v23  ;;  %v778_v10 = vsel %vm414_vm6, %v762_v5, 0.0  ;;  %v764_v24 = vadd.f32 %v747_v17, %v1513_v29  ;;  %v766_v43 = vadd.f32 %v698_v49, %v1522_v0  ;;  %v751_v3 = vadd.f32 %v750_v63, %v629_v1 }
 0x315   :  { %794 = vst [vmem:[#allocation5 + $0x48] sm:$0xff] %v778_v10  ;;  %v779_v39 = vsel %vm415_vm5, %v763_v45, 0.0  ;;  %v781_v59 = vsel %vm413_vm4, %v765_v46, 0.0  ;;  %v767_v22 = vadd.f32 %v749_v38, %v1518_v20 }
 0x316   :  { %795 = vst [vmem:[#allocation5 + $0x50] sm:$0xff] %v779_v39  ;;  %797 = vst [vmem:[#allocation5 + $0x60] sm:$0xff] %v781_v59  ;;  %v780_v9 = vsel %vm416_vm7, %v764_v24, 0.0  ;;  %v782_v29 = vsel %vm414_vm6, %v766_v43, 0.0  ;;  %v768_v0 = vadd.f32 %v751_v3, %v1527_v12 }
 0x317   :  { %796 = vst [vmem:[#allocation5 + $0x58] sm:$0xff] %v780_v9  ;;  %798 = vst [vmem:[#allocation5 + $0x68] sm:$0xff] %v782_v29  ;;  %v783_v60 = vsel %vm415_vm5, %v767_v22, 0.0 }
 0x318   :  { %799 = vst [vmem:[#allocation5 + $0x70] sm:$0xff] %v783_v60  ;;  %v784_v56 = vsel %vm416_vm7, %v768_v0, 0.0 }
 0x319   :  { %800 = vst [vmem:[#allocation5 + $0x78] sm:$0xff] %v784_v56 }
 0x31a   :  { %1038 = shalt.err (!%p1035_p12)
}
 0x31b   :  { %s1039_s17 = scalar_lea.hbm %s1813_s6, 2048 }
 0x31c   :  { %p1040_p13 = scmp.ne.s32.totalorder %s1813_s6, %s1039_s17  ;;  %p1043_p0 = scmp.lt.u32.totalorder %s1039_s17, %s1813_s6 }
 0x31e   :  { %p1045_p1 = pnand %p1043_p0, %p1040_p13 }
 0x320   :  { %1048 = shalt.err (!%p1045_p1)
}
 0x321   :  { %812 = dma.vmem_to_hbm [thread:$0]  %s807_s13, 2048, %s1813_s6, [#allocation4], %s1054_s7, %s1054_s7, %s1055_s8  }
 0x322   :  { %1051 = dma.done.wait [#allocation4], 2048  }
 0x323   :  { %1052 = vsyncadd [#allocation4], 4294965248 }
 0x324   :  { %816 = vsyncpa [#allocation3], 1 }
 0x325   :  { %817 = vsyncpa [#allocation4], 1 }

</bundles_post_ra>
